<compile_context>
chip_gen: v7x
topology: tpu7x:2x2x1
jax: 0.10.0
libtpu: 0.0.40
codegen_flags: <defaults>
</compile_context>

<pallas_src>
import functools

import jax
import jax.numpy as jnp
import numpy as np
from jax.experimental import pallas as pl
from jax.experimental.pallas import tpu as pltpu

# Module hyper-parameters (the **kwargs of the depthwise conv in Xception blocks).
KH, KW = 3, 3          # kernel_size=3
PAD = 1                # padding=1
# stride=1, dilation=1, bias=False

LANE = 128             # TPU lane width
_FUSE_CIN_MAX = 96     # fold depthwise into the matmul when Cin is this small


# --------------------------------------------------------------------------- #
# Kernels
# --------------------------------------------------------------------------- #
def _sepconv_fused_kernel(xs_ref, w_ref, o_ref, *, TH, W, Cin, Cout_pad):
    """Small-Cin path: depthwise + pointwise folded into ONE MXU matmul.

    xs_ref : (1, TH+2, W+2, Cin)   padded input row strip (1-row halos)
    w_ref  : (KH*KW*Cin, Cout_pad) fused weight  w[(kh*KW+kw)*Cin + c, o]
                                   = dw[c, kh, kw] * pw[o, c]
    o_ref  : (1, TH, W, Cout_pad)  lane-dense output strip
    """
    taps = []
    for kh in range(KH):
        for kw in range(KW):
            # per-tap ref slice: never materialize the whole padded strip value
            taps.append(xs_ref[0, kh:kh + TH, kw:kw + W, :])      # (TH, W, Cin)
    patches = jnp.concatenate(taps, axis=-1)                      # (TH, W, 9*Cin)
    y = jnp.dot(patches.reshape(TH * W, KH * KW * Cin), w_ref[...],
                preferred_element_type=jnp.float32)               # MXU, K = 9*Cin
    o_ref[0] = y.reshape(TH, W, Cout_pad)


def _sepconv_taps_kernel(xs_ref, dw_ref, pw_ref, o_ref, *, TH, W, Cin, Cout_pad):
    """Large-Cin path: 9-tap VPU depthwise + MXU pointwise (K = Cin).

    xs_ref : (1, TH+2, W+2, Cin)
    dw_ref : (KH*KW, Cin)     tap rows (pre-reshaped in the wrapper)
    pw_ref : (Cin, Cout_pad)
    o_ref  : (1, TH, W, Cout_pad)
    """
    dw = dw_ref[...]                                   # read all 9 tap rows once
    acc = jnp.zeros((TH, W, Cin), dtype=jnp.float32)
    for kh in range(KH):
        for kw in range(KW):
            acc = acc + xs_ref[0, kh:kh + TH, kw:kw + W, :] * dw[kh * KW + kw, :]
    y = jnp.dot(acc.reshape(TH * W, Cin), pw_ref[...],
                preferred_element_type=jnp.float32)
    o_ref[0] = y.reshape(TH, W, Cout_pad)


# --------------------------------------------------------------------------- #
# Wrappers
# --------------------------------------------------------------------------- #
def seperable_conv_nhwc(x_nhwc, dw_weight, pw_weight, *,
                        tile_rows=None, fuse=None):
    """Channels-last entry point (avoids NCHW<->NHWC HBM round trips).

    x_nhwc   : (N, H, W, Cin) float32
    dw_weight: (Cin, 1, 3, 3)   nn.Conv2d depthwise weight
    pw_weight: (Cout, Cin, 1, 1) nn.Conv2d pointwise weight
    returns  : (N, H, W, Cout) float32
    """
    N, H, W, Cin = x_nhwc.shape
    Cout = pw_weight.shape[0]
    Cout_pad = ((Cout + LANE - 1) // LANE) * LANE          # lane-dense stores
    Wp = W + 2 * PAD

    # ---- row-strip height: VMEM-budgeted (sized for the smallest generation,
    # v7x = 64 MiB per TensorCore), keep >=2 strips so the strip axis can shard
    # across v7x's two cores even at batch 1.
    if tile_rows is None:
        per_row = ((Wp * Cin) + (W * Cout_pad)) * 4 * 2    # dbl-buffered in+out
        th = max(1, (8 * 1024 * 1024) // per_row)
        th = min(th, max(1, -(-H // 2)))
        if th >= 8:
            th -= th % 8                                   # keep M = th*W MXU friendly
    else:
        th = int(tile_rows)
    th = max(1, min(th, H))
    ns = -(-H // th)                                       # number of row strips
    h_pad = ns * th

    # ---- operand prep (plain-JAX glue) ------------------------------------
    # Pad: 1 row/col of zeros on each side (conv pad=1) plus extra zero rows at
    # the bottom so H is a multiple of th; extra rows only feed discarded output.
    xp = jnp.pad(x_nhwc.astype(jnp.float32),
                 ((0, 0), (PAD, PAD + (h_pad - H)), (PAD, PAD), (0, 0)))
    # Overlapping (th+2)-row halo strips so a plain Blocked index_map can
    # address them: (N, ns, th+2, Wp, Cin) -> flatten to (N*ns, th+2, Wp, Cin).
    row_idx = jnp.arange(ns)[:, None] * th + jnp.arange(th + 2)[None, :]
    x_strips = xp[:, row_idx].reshape(N * ns, th + 2, Wp, Cin)

    dw = dw_weight[:, 0, :, :].astype(jnp.float32)         # (Cin, 3, 3)
    pw = pw_weight[:, :, 0, 0].astype(jnp.float32)         # (Cout, Cin)

    if fuse is None:
        fuse = Cin <= _FUSE_CIN_MAX

    if fuse:
        # fused (9*Cin, Cout_pad) weight: row (kh*KW+kw)*Cin + c = dw[c,kh,kw]*pw[:,c]
        w_f = (jnp.transpose(dw, (1, 2, 0))[:, :, :, None] *        # (3,3,Cin,1)
               jnp.transpose(pw)[None, None, :, :])                 # (1,1,Cin,Cout)
        w_f = w_f.reshape(KH * KW * Cin, Cout)
        w_f = jnp.pad(w_f, ((0, 0), (0, Cout_pad - Cout)))
        kernel = functools.partial(_sepconv_fused_kernel,
                                   TH=th, W=W, Cin=Cin, Cout_pad=Cout_pad)
        weight_args = (w_f,)
        weight_specs = [pl.BlockSpec((KH * KW * Cin, Cout_pad),
                                     lambda n, s: (0, 0))]
    else:
        dw9 = jnp.transpose(dw, (1, 2, 0)).reshape(KH * KW, Cin)    # (9, Cin)
        pw_p = jnp.pad(jnp.transpose(pw), ((0, 0), (0, Cout_pad - Cout)))
        kernel = functools.partial(_sepconv_taps_kernel,
                                   TH=th, W=W, Cin=Cin, Cout_pad=Cout_pad)
        weight_args = (dw9, pw_p)
        weight_specs = [pl.BlockSpec((KH * KW, Cin), lambda n, s: (0, 0)),
                        pl.BlockSpec((Cin, Cout_pad), lambda n, s: (0, 0))]

    # ---- explicit VMEM budget (double-buffered input + output strips) ------
    in_block = (th + 2) * Wp * Cin * 4
    out_block = th * W * Cout_pad * 4
    w_bytes = sum(int(np.prod(a.shape)) * 4 for a in weight_args)
    vmem_limit = int(min(max(2 * (2 * (in_block + out_block) + w_bytes) + (4 << 20),
                             16 << 20),
                         48 << 20))

    out_pad = pl.pallas_call(
        kernel,
        out_shape=jax.ShapeDtypeStruct((N, h_pad, W, Cout_pad), jnp.float32),
        grid_spec=pltpu.PrefetchScalarGridSpec(
            num_scalar_prefetch=0,
            grid=(N, ns),                                  # batch x row-strip
            in_specs=[pl.BlockSpec((1, th + 2, Wp, Cin),
                                   lambda n, s: (n * ns + s, 0, 0, 0))]
                     + weight_specs,
            out_specs=pl.BlockSpec((1, th, W, Cout_pad),
                                   lambda n, s: (n, s, 0, 0)),
        ),
        compiler_params=pltpu.CompilerParams(
            dimension_semantics=("parallel", "parallel"),
            vmem_limit_bytes=vmem_limit),
    )(x_strips, *weight_args)

    # drop the padded rows / padded output channels
    return out_pad[:, :H, :, :Cout]


def seperable_conv(x_nchw, dw_weight, pw_weight, *, tile_rows=None, fuse=None):
    """NCHW wrapper matching the PyTorch module's layout exactly.

    Note: the NCHW<->NHWC transposes are extra full-tensor HBM passes; use
    seperable_conv_nhwc directly when the surrounding model is channels-last.
    """
    x_nhwc = jnp.transpose(x_nchw, (0, 2, 3, 1))
    y = seperable_conv_nhwc(x_nhwc, dw_weight, pw_weight,
                            tile_rows=tile_rows, fuse=fuse)
    return jnp.transpose(y, (0, 3, 1, 2))


# --------------------------------------------------------------------------- #
# Pure-JAX reference (mirrors PyTorch Conv2d semantics, NCHW)
# --------------------------------------------------------------------------- #
def _reference(x_nchw, dw_weight, pw_weight):
    dn = jax.lax.conv_dimension_numbers(x_nchw.shape, dw_weight.shape,
                                        ("NCHW", "OIHW", "NCHW"))
    Cin = x_nchw.shape[1]
    y = jax.lax.conv_general_dilated(
        x_nchw, dw_weight, window_strides=(1, 1),
        padding=((PAD, PAD), (PAD, PAD)),
        dimension_numbers=dn, feature_group_count=Cin)
    z = jax.lax.conv_general_dilated(
        y, pw_weight, window_strides=(1, 1), padding="VALID",
        dimension_numbers=dn)
    return z


if __name__ == "__main__":
    # Small deterministic example consistent with the module's forward.
    N, Cin, Cout, H, W = 2, 4, 8, 16, 16

    key = jax.random.PRNGKey(0)
    kx, kd, kp = jax.random.split(key, 3)
    x = jax.random.normal(kx, (N, Cin, H, W), dtype=jnp.float32)
    # nn.Conv2d weight shapes: depthwise (Cin, 1, 3, 3), pointwise (Cout, Cin, 1, 1)
    dw_weight = jax.random.normal(kd, (Cin, 1, KH, KW), dtype=jnp.float32) * 0.1
    pw_weight = jax.random.normal(kp, (Cout, Cin, 1, 1), dtype=jnp.float32) * 0.1

    ref = _reference(x, dw_weight, pw_weight)

    # Default path: small Cin -> fused im2col matmul, th=8 -> grid (2, 2).
    out = jax.block_until_ready(seperable_conv(x, dw_weight, pw_weight))
    np.testing.assert_allclose(np.asarray(out), np.asarray(ref),
                               rtol=1e-5, atol=1e-5)

    # Force the large-Cin (tap-loop) code path on the same small shapes.
    out2 = jax.block_until_ready(seperable_conv(x, dw_weight, pw_weight, fuse=False))
    np.testing.assert_allclose(np.asarray(out2), np.asarray(ref),
                               rtol=1e-5, atol=1e-5)

    # Non-divisible strip height exercises the bottom-edge / halo handling.
    out3 = jax.block_until_ready(seperable_conv(x, dw_weight, pw_weight, tile_rows=6))
    np.testing.assert_allclose(np.asarray(out3), np.asarray(ref),
                               rtol=1e-5, atol=1e-5)

    print("KERNEL_OK")
</pallas_src>

<mosaic_0001>
module attributes {stable_mosaic.version = 11 : i64} {
  func.func @_sepconv_fused_kernel(%arg0: i32, %arg1: i32, %arg2: memref<1x10x18x4xf32, #tpu.memory_space<vmem>>, %arg3: memref<36x128xf32, #tpu.memory_space<vmem>>, %arg4: memref<1x8x16x128xf32, #tpu.memory_space<vmem>>) attributes {dimension_semantics = [#tpu.dimension_semantics<parallel>, #tpu.dimension_semantics<parallel>], iteration_bounds = array<i64: 2, 2>, scalar_prefetch = 0 : i64, scratch_operands = 0 : i64, tpu.core_type = #tpu.core_type<tc>, window_params = [{transform_indices = @transform_0, window_bounds = array<i64: 1, 10, 18, 4>}, {pipeline_mode = #tpu.pipeline_mode<synchronous>, transform_indices = @transform_1, window_bounds = array<i64: 36, 128>}, {transform_indices = @transform_2, window_bounds = array<i64: 1, 8, 16, 128>}]} {
    %c0 = arith.constant 0 : index
    %c0_0 = arith.constant 0 : index
    %c0_1 = arith.constant 0 : index
    %c0_2 = arith.constant 0 : index
    %0 = vector.load %arg2[%c0, %c0_0, %c0_1, %c0_2] : memref<1x10x18x4xf32, #tpu.memory_space<vmem>>, vector<1x8x16x4xf32>
    %1 = vector.shape_cast %0 : vector<1x8x16x4xf32> to vector<8x16x4xf32>
    %c0_3 = arith.constant 0 : index
    %c0_4 = arith.constant 0 : index
    %c1 = arith.constant 1 : index
    %c0_5 = arith.constant 0 : index
    %2 = vector.load %arg2[%c0_3, %c0_4, %c1, %c0_5] : memref<1x10x18x4xf32, #tpu.memory_space<vmem>>, vector<1x8x16x4xf32>
    %3 = vector.shape_cast %2 : vector<1x8x16x4xf32> to vector<8x16x4xf32>
    %c0_6 = arith.constant 0 : index
    %c0_7 = arith.constant 0 : index
    %c2 = arith.constant 2 : index
    %c0_8 = arith.constant 0 : index
    %4 = vector.load %arg2[%c0_6, %c0_7, %c2, %c0_8] : memref<1x10x18x4xf32, #tpu.memory_space<vmem>>, vector<1x8x16x4xf32>
    %5 = vector.shape_cast %4 : vector<1x8x16x4xf32> to vector<8x16x4xf32>
    %c0_9 = arith.constant 0 : index
    %c1_10 = arith.constant 1 : index
    %c0_11 = arith.constant 0 : index
    %c0_12 = arith.constant 0 : index
    %6 = vector.load %arg2[%c0_9, %c1_10, %c0_11, %c0_12] : memref<1x10x18x4xf32, #tpu.memory_space<vmem>>, vector<1x8x16x4xf32>
    %7 = vector.shape_cast %6 : vector<1x8x16x4xf32> to vector<8x16x4xf32>
    %c0_13 = arith.constant 0 : index
    %c1_14 = arith.constant 1 : index
    %c1_15 = arith.constant 1 : index
    %c0_16 = arith.constant 0 : index
    %8 = vector.load %arg2[%c0_13, %c1_14, %c1_15, %c0_16] : memref<1x10x18x4xf32, #tpu.memory_space<vmem>>, vector<1x8x16x4xf32>
    %9 = vector.shape_cast %8 : vector<1x8x16x4xf32> to vector<8x16x4xf32>
    %c0_17 = arith.constant 0 : index
    %c1_18 = arith.constant 1 : index
    %c2_19 = arith.constant 2 : index
    %c0_20 = arith.constant 0 : index
    %10 = vector.load %arg2[%c0_17, %c1_18, %c2_19, %c0_20] : memref<1x10x18x4xf32, #tpu.memory_space<vmem>>, vector<1x8x16x4xf32>
    %11 = vector.shape_cast %10 : vector<1x8x16x4xf32> to vector<8x16x4xf32>
    %c0_21 = arith.constant 0 : index
    %c2_22 = arith.constant 2 : index
    %c0_23 = arith.constant 0 : index
    %c0_24 = arith.constant 0 : index
    %12 = vector.load %arg2[%c0_21, %c2_22, %c0_23, %c0_24] : memref<1x10x18x4xf32, #tpu.memory_space<vmem>>, vector<1x8x16x4xf32>
    %13 = vector.shape_cast %12 : vector<1x8x16x4xf32> to vector<8x16x4xf32>
    %c0_25 = arith.constant 0 : index
    %c2_26 = arith.constant 2 : index
    %c1_27 = arith.constant 1 : index
    %c0_28 = arith.constant 0 : index
    %14 = vector.load %arg2[%c0_25, %c2_26, %c1_27, %c0_28] : memref<1x10x18x4xf32, #tpu.memory_space<vmem>>, vector<1x8x16x4xf32>
    %15 = vector.shape_cast %14 : vector<1x8x16x4xf32> to vector<8x16x4xf32>
    %c0_29 = arith.constant 0 : index
    %c2_30 = arith.constant 2 : index
    %c2_31 = arith.constant 2 : index
    %c0_32 = arith.constant 0 : index
    %16 = vector.load %arg2[%c0_29, %c2_30, %c2_31, %c0_32] : memref<1x10x18x4xf32, #tpu.memory_space<vmem>>, vector<1x8x16x4xf32>
    %17 = vector.shape_cast %16 : vector<1x8x16x4xf32> to vector<8x16x4xf32>
    %18 = tpu.concatenate %1, %3, %5, %7, %9, %11, %13, %15, %17 in 2 : vector<8x16x4xf32>, vector<8x16x4xf32>, vector<8x16x4xf32>, vector<8x16x4xf32>, vector<8x16x4xf32>, vector<8x16x4xf32>, vector<8x16x4xf32>, vector<8x16x4xf32>, vector<8x16x4xf32> -> vector<8x16x36xf32>
    %19 = vector.shape_cast %18 : vector<8x16x36xf32> to vector<128x36xf32>
    %c0_33 = arith.constant 0 : index
    %c0_34 = arith.constant 0 : index
    %20 = vector.load %arg3[%c0_33, %c0_34] : memref<36x128xf32, #tpu.memory_space<vmem>>, vector<36x128xf32>
    %cst = arith.constant dense<0.000000e+00> : vector<128x128xf32>
    %21 = tpu.matmul %19, %20, %cst {dimension_numbers = #tpu.dot_dimension_numbers<[1], [0], [0], [1], [0, 0, 1, 1], [], []>} : vector<128x36xf32>, vector<36x128xf32>, vector<128x128xf32> -> vector<128x128xf32>
    %22 = vector.shape_cast %21 : vector<128x128xf32> to vector<8x16x128xf32>
    %c0_35 = arith.constant 0 : index
    %c0_36 = arith.constant 0 : index
    %c0_37 = arith.constant 0 : index
    %c0_38 = arith.constant 0 : index
    %23 = vector.load %arg4[%c0_35, %c0_36, %c0_37, %c0_38] : memref<1x8x16x128xf32, #tpu.memory_space<vmem>>, vector<1x8x16x128xf32>
    %24 = vector.shape_cast %23 : vector<1x8x16x128xf32> to vector<8x16x128xf32>
    %25 = vector.shape_cast %22 : vector<8x16x128xf32> to vector<1x8x16x128xf32>
    tpu.vector_store %arg4[%c0_35, %c0_36, %c0_37, %c0_38], %25 {strides = array<i32>} : memref<1x8x16x128xf32, #tpu.memory_space<vmem>>, vector<1x8x16x128xf32>,
    return
  }
  func.func @transform_0(%arg0: i32, %arg1: i32) -> (i32, i32, i32, i32) {
    %c2_i32 = arith.constant 2 : i32
    %0 = arith.muli %arg0, %c2_i32 : i32
    %1 = arith.addi %0, %arg1 : i32
    %c0_i32 = arith.constant 0 : i32
    %c0_i32_0 = arith.constant 0 : i32
    %c0_i32_1 = arith.constant 0 : i32
    %c0_i32_2 = arith.constant 0 : i32
    return %1, %c0_i32, %c0_i32_0, %c0_i32_1 : i32, i32, i32, i32
  }
  func.func @transform_1(%arg0: i32, %arg1: i32) -> (i32, i32) {
    %c0_i32 = arith.constant 0 : i32
    %c0_i32_0 = arith.constant 0 : i32
    %c0_i32_1 = arith.constant 0 : i32
    return %c0_i32, %c0_i32_0 : i32, i32
  }
  func.func @transform_2(%arg0: i32, %arg1: i32) -> (i32, i32, i32, i32) {
    %c0_i32 = arith.constant 0 : i32
    %c0_i32_0 = arith.constant 0 : i32
    %c0_i32_1 = arith.constant 0 : i32
    return %arg0, %arg1, %c0_i32, %c0_i32_0 : i32, i32, i32, i32
  }
}

</mosaic_0001>

<bundles_post_ra>
// kernel: tpu_custom_call.1
= control target key start
LH: loop header
LB: loop body
LE: loop exit
PB: predicated region body
PF: predicated region fallthrough
CT: control target
= control target key end

     0   :  { %7 = vsyncpa [#allocation3], 0  ;;  %s2414_s0 = inlined_call_operand.vmem [shape: f32[4,10,18,4], index: 0, kind: input, shape index: {}]   ;;  %s2415_s1 = inlined_call_operand.vmem [shape: f32[36,128], index: 1, kind: input, shape index: {}]   ;;  %s2416_s2 = inlined_call_operand.hbm [shape: f32[2,16,16,128], index: 2, kind: output, shape index: {}]  }
   0x1   :  { %9 = vsyncpa [#allocation3 + $0x1], 0  ;;  %s1679_s9 = smov 0   ;;  %s1681_s10 = smov 0  }
   0x2   :  { %s1683_s11 = smov 0   ;;  %s1685_s12 = smov 0  }
   0x3   :  { %s1687_s13 = smov 0   ;;  %s1689_s14 = smov 0  }
   0x4   :  { %s1691_s15 = smov 0   ;;  %s1693_s16 = smov 0  }
   0x5 LB: > { %s1277_s17 = sadd.s32 4294967295, %s1652_s16   ;;  %s1278_s18 = sadd.s32 4294967294, %s1652_s16   ;;  %s1652_s16 = sphi %s1693_s16, %s15_s16   ;;  %s1648_s15 = sphi %s1691_s15, %s2440_s15   ;;  %s1644_s14 = sphi %s1689_s14, %s2439_s14   ;;  %s1640_s13 = sphi %s1687_s13, %s2438_s13   ;;  %s1636_s12 = sphi %s1685_s12, %s2437_s12   ;;  %s1632_s11 = sphi %s1683_s11, %s2436_s11   ;;  %s1628_s10 = sphi %s1681_s10, %s2435_s10   ;;  %s1624_s9 = sphi %s1679_s9, %s2434_s9  }
   0x6   : > { %s24_s19 = sadd.s32 1, %s1644_s14  ;;  %s27_s20 = sadd.s32 1, %s1648_s15 }
   0x7   : > { %p25_p0 = scmp.ge.s32.totalorder %s24_s19, 2  ;;  %p97_p1 = scmp.ne.s32.totalorder %s1632_s11, %s1628_s10 }
   0x8   : > { %p98_p2 = scmp.eq.s32.totalorder %s1277_s17, 3  ;;  %p103_p5 = scmp.ne.s32.totalorder %s1628_s10, %s1624_s9 }
   0x9   : > { %s2442_s19 = smov (%p25_p0, %s24_s19), 0  ;;  %s2444_s20 = smov (!%p25_p0, %s27_s20), %s1648_s15 }
   0xa   : > { %s83_s21 = ssub.s32 %s1644_s14, %s2442_s19  ;;  %p1730_p3 = por %p98_p2, %p97_p1 }
   0xb   : > { %p29_p4 = scmp.ge.s32.totalorder %s2444_s20, 2  ;;  %p104_p6 = scmp.eq.s32.totalorder %s1278_s18, 3 }
   0xc   : > { %p1283_p7 = scmp.ge.s32.totalorder %s1652_s16, 1  ;;  %p137_p9 = scmp.lt.s32.totalorder %s1652_s16, 5 }
   0xd   : > { %s2446_s20 = smov (%p29_p4, %s2444_s20), 0  ;;  %p1739_p8 = por %p104_p6, %p103_p5 }
   0xe   : > { %s82_s24 = ssub.s32 %s1648_s15, %s2446_s20  ;;  %s87_s25 = sadd.s32 1, %s1632_s11 }
   0xf   : > { %s84_s26 = sor.u32 %s83_s21, %s82_s24  ;;  %p138_p10 = pnand %p1283_p7, %p137_p9 }
  0x10   : > { %p85_p11 = scmp.eq.s32.totalorder %s84_s26, 0 }
  0x11   : > { %141 = sbr.rel (%p138_p10) target bundleno = 629 (0x275), region = 28 }
  0x12   : > { %s1748_s27 = scalar_select %p85_p11, %s1632_s11, %s87_s25  }
  0x18   : > { %s1285_s28 = sshll.u32 %s1640_s13, 1  ;;  %s1654_s6 = smov 4   ;;  %v965_v26 = vld [vmem:[%s2415_s1] sm:$0xff]  ;;  %v966_v27 = vld [vmem:[%s2415_s1 + $0x8] sm:$0xff]  ;;  %v967_v31 = vld [vmem:[%s2415_s1 + $0x10] sm:$0xff]  ;;  %vm1019_vm0 = vcmask 1043456  }
  0x19   : > { %s162_s29 = sadd.s32 %s1636_s12, %s1285_s28  ;;  %s1655_s7 = smov 8   ;;  %v1463_v30 = vpack.c.bf16 %v966_v27, %v965_v26  ;;  %v968_v32 = vld [vmem:[%s2415_s1 + $0x18] sm:$0xff]  ;;  %v969_v36 = vld [vmem:[%s2415_s1 + $0x20] sm:$0xf]  ;;  %vm829_vm1 = vcmask 31744   ;;  %vm846_vm2 = vcmask 64512  }
  0x1a   : > { %p163_p12 = scmp.lt.s32.totalorder %s162_s29, 3  ;;  %s1656_s8 = smov 12   ;;  %v1467_v35 = vpack.c.bf16 %v968_v32, %v967_v31  ;;  %vm863_vm3 = vcmask 97280   ;;  %vm880_vm4 = vcmask 130048   ;;  %vm897_vm5 = vcmask 162816  }
  0x1b   : > { %s1657_s17 = smov 16   ;;  %s1658_s18 = smov 20   ;;  %1464 = vmatprep.subr.bf16.mxu0 %v1463_v30  ;;  %1471 = vmatprep.subr.bf16.mxu1 %v1463_v30  ;;  %vm914_vm6 = vcmask 195584   ;;  %vm931_vm7 = vcmask 228352   ;;  %vm948_vm8 = vcmask 261120   ;;  %vm970_vm9 = vcmask 293888  }
  0x1c   : > { %s2448_s29 = smov (!%p163_p12, %s162_s29), 3  ;;  %s1659_s21 = smov 24   ;;  %1466 = vmatpush3.bf16.msra.mxu0 %v1463_v30  ;;  %1474 = vmatpush3.bf16.msra.mxu1 %v1463_v30 }
  0x1d   : > { %s1477_s30 = smul.u32 240, %s2448_s29  ;;  %s1660_s24 = smov 28   ;;  %1468 = vmatprep.subr.bf16.mxu0 %v1467_v35  ;;  %1472 = vmatprep.subr.bf16.mxu1 %v1467_v35 }
  0x1e   : > { %s1661_s26 = smov 32  }
  0x1f   : > { %s1755_s5 = scalar_lea.vmem %s2414_s0, %s1477_s30 }
  0x20   : > { %v188_v0 = vld [vmem:[%s1755_s5 + $0x9] sm:$0xff]  ;;  %v187_v1 = vld [vmem:[%s1755_s5 + $0x1] sm:$0xff]  ;;  %v1786_v8 = vld [vmem:[%s1755_s5 + $0x78] sm:$0xff]  ;;  %1470 = vmatpush3.bf16.msra.mxu0 %v1467_v35  ;;  %1475 = vmatpush3.bf16.msra.mxu1 %v1467_v35 }
  0x21   : > { %335 = vrot.lane.b32.xlu1 %v188_v0, %s1654_s6  ;;  %333 = vrot.lane.b32.xlu0 %v187_v1, %s1654_s6  ;;  %v1762_v2 = vld [vmem:[%s1755_s5 + $0x69] sm:$0xff]  ;;  %v1765_v3 = vld [vmem:[%s1755_s5 + $0x61] sm:$0xff] }
  0x22   : > { %v1772_v4 = vld [vmem:[%s1755_s5 + $0x62] sm:$0xff]  ;;  %v1779_v6 = vld [vmem:[%s1755_s5 + $0x6a] sm:$0xff]  ;;  %v1789_v9 = vld [vmem:[%s1755_s5 + $0x18] sm:$0xff]  ;;  %1437 = vmatprep.subr.msk.mxu0 %vm1019_vm0, %v969_v36  ;;  %1473 = vmatprep.subr.msk.mxu1 %vm1019_vm0, %v969_v36 }
  0x23   : > { %v203_v5 = vld [vmem:[%s1755_s5 + $0x2] sm:$0xff]  ;;  %v204_v7 = vld [vmem:[%s1755_s5 + $0xa] sm:$0xff]  ;;  %v1806_v12 = vld [vmem:[%s1755_s5 + $0x79] sm:$0xff] }
  0x24   : > { %v1796_v10 = vld [vmem:[%s1755_s5 + $0x80] sm:$0xff]  ;;  %v1843_v20 = vld [vmem:[%s1755_s5 + $0x90] sm:$0xff]  ;;  %v1860_v22 = vld [vmem:[%s1755_s5 + $0x98] sm:$0xff]  ;;  %1438 = vmatpush3.msk.msra.mxu0 %vm1019_vm0, %v969_v36  ;;  %1476 = vmatpush3.msk.msra.mxu1 %vm1019_vm0, %v969_v36 }
  0x25   : > { %351 = vrot.lane.b32.xlu1 %v1762_v2, %s1654_s6  ;;  %349 = vrot.lane.b32.xlu0 %v1765_v3, %s1654_s6  ;;  %v1799_v11 = vld [vmem:[%s1755_s5 + $0x20] sm:$0xff]  ;;  %v1846_v21 = vld [vmem:[%s1755_s5 + $0x30] sm:$0xff] }
  0x26   : > { %v1303_v13 = vld [vmem:[%s1755_s5 + $0x19] sm:$0xff]  ;;  %v1816_v14 = vld [vmem:[%s1755_s5 + $0x81] sm:$0xff]  ;;  %v1359_v24 = vld [vmem:[%s1755_s5 + $0x91] sm:$0xff] }
  0x27   : > { %v1304_v15 = vld [vmem:[%s1755_s5 + $0x21] sm:$0xff]  ;;  %v1863_v23 = vld [vmem:[%s1755_s5 + $0x38] sm:$0xff]  ;;  %v1947_v47 = vld [vmem:[%s1755_s5 + $0xb0] sm:$0xff] }
  0x28   : > { %v1823_v16 = vld [vmem:[%s1755_s5 + $0x7a] sm:$0xff]  ;;  %v1836_v18 = vld [vmem:[%s1755_s5 + $0x82] sm:$0xff]  ;;  %v1351_v25 = vld [vmem:[%s1755_s5 + $0x31] sm:$0xff]  ;;  %2427 = vst [vmem:[#allocation8_spill] sm:$0xff] %v1947_v47 }
  0x29   : > { %413 = vrot.lane.b32.xlu1 %v1772_v4, %s1655_s7  ;;  %397 = vrot.lane.b32.xlu0 %v203_v5, %s1655_s7  ;;  %v1319_v17 = vld [vmem:[%s1755_s5 + $0x1a] sm:$0xff]  ;;  %2424 = vst [vmem:[#allocation5_spill] sm:$0xff] %v1836_v18  ;;  %v1320_v19 = vld [vmem:[%s1755_s5 + $0x22] sm:$0xff] }
  0x2a   : > { %v1360_v28 = vld [vmem:[%s1755_s5 + $0x99] sm:$0xff]  ;;  %v1919_v39 = vld [vmem:[%s1755_s5 + $0xa8] sm:$0xff]  ;;  %v1950_v48 = vld [vmem:[%s1755_s5 + $0x50] sm:$0xff] }
  0x2b   : > { %v1352_v29 = vld [vmem:[%s1755_s5 + $0x39] sm:$0xff]  ;;  %2425 = vst [vmem:[#allocation6_spill] sm:$0xff] %v1919_v39  ;;  %v1922_v40 = vld [vmem:[%s1755_s5 + $0x48] sm:$0xff]  ;;  %2428 = vst [vmem:[#allocation9_spill] sm:$0xff] %v1950_v48 }
  0x2c   : > { %v1375_v33 = vld [vmem:[%s1755_s5 + $0x92] sm:$0xff]  ;;  %v1376_v37 = vld [vmem:[%s1755_s5 + $0x9a] sm:$0xff]  ;;  %2426 = vst [vmem:[#allocation7_spill] sm:$0xff] %v1922_v40  ;;  %v1361_v51 = vld [vmem:[%s1755_s5 + $0xa9] sm:$0xff] }
  0x2d   : > { %415 = vrot.lane.b32.xlu1 %v1779_v6, %s1655_s7  ;;  %399 = vrot.lane.b32.xlu0 %v204_v7, %s1655_s7  ;;  %v1367_v34 = vld [vmem:[%s1755_s5 + $0x32] sm:$0xff]  ;;  %v1368_v38 = vld [vmem:[%s1755_s5 + $0x3a] sm:$0xff] }
  0x2e   : > { %v1353_v52 = vld [vmem:[%s1755_s5 + $0x49] sm:$0xff]  ;;  %v1362_v59 = vld [vmem:[%s1755_s5 + $0xb1] sm:$0xff]  ;;  %v1347_v35 = vld [vmem:[%s1755_s5 + $0xc0] sm:$0xff] }
  0x2f   : > { %v1354_v60 = vld [vmem:[%s1755_s5 + $0x51] sm:$0xff] }
  0x30   : > { %v1377_v63 = vld [vmem:[%s1755_s5 + $0xaa] sm:$0xff]  ;;  %v1370_v26 = vld [vmem:[%s1755_s5 + $0x52] sm:$0xff] }
  0x31   : > { %477 = vrot.lane.b32.xlu1 %v1786_v8, %s1656_s8  ;;  %461 = vrot.lane.b32.xlu0 %v1789_v9, %s1656_s8  ;;  %v1369_v0 = vld [vmem:[%s1755_s5 + $0x4a] sm:$0xff] }
  0x35   : > { %479 = vrot.lane.b32.xlu1 %v1796_v10, %s1656_s8  ;;  %463 = vrot.lane.b32.xlu0 %v1799_v11, %s1656_s8 }
  0x39   : > { %541 = vrot.lane.b32.xlu1 %v1806_v12, %s1657_s17  ;;  %525 = vrot.lane.b32.xlu0 %v1303_v13, %s1657_s17 }
  0x3d   : > { %353 = vrot.lane.b32.xlu1 %v1806_v12, %s1654_s6  ;;  %337 = vrot.lane.b32.xlu0 %v1303_v13, %s1654_s6 }
  0x41   : > { %543 = vrot.lane.b32.xlu1 %v1816_v14, %s1657_s17  ;;  %527 = vrot.lane.b32.xlu0 %v1304_v15, %s1657_s17 }
  0x45   : > { %605 = vrot.lane.b32.xlu1 %v1823_v16, %s1658_s18  ;;  %589 = vrot.lane.b32.xlu0 %v1319_v17, %s1658_s18 }
  0x49   : > { %355 = vrot.lane.b32.xlu1 %v1816_v14, %s1654_s6  ;;  %339 = vrot.lane.b32.xlu0 %v1304_v15, %s1654_s6 }
  0x4d   : > { %417 = vrot.lane.b32.xlu1 %v1823_v16, %s1655_s7  ;;  %401 = vrot.lane.b32.xlu0 %v1319_v17, %s1655_s7 }
  0x51   : > { %607 = vrot.lane.b32.xlu1 %v1836_v18, %s1658_s18  ;;  %591 = vrot.lane.b32.xlu0 %v1320_v19, %s1658_s18 }
  0x55   : > { %669 = vrot.lane.b32.xlu1 %v1843_v20, %s1659_s21  ;;  %653 = vrot.lane.b32.xlu0 %v1846_v21, %s1659_s21 }
  0x59   : > { %419 = vrot.lane.b32.xlu1 %v1836_v18, %s1655_s7  ;;  %403 = vrot.lane.b32.xlu0 %v1320_v19, %s1655_s7 }
  0x5d   : > { %481 = vrot.lane.b32.xlu1 %v1843_v20, %s1656_s8  ;;  %465 = vrot.lane.b32.xlu0 %v1846_v21, %s1656_s8 }
  0x61   : > { %671 = vrot.lane.b32.xlu1 %v1860_v22, %s1659_s21  ;;  %655 = vrot.lane.b32.xlu0 %v1863_v23, %s1659_s21 }
  0x65   : > { %733 = vrot.lane.b32.xlu1 %v1359_v24, %s1660_s24  ;;  %717 = vrot.lane.b32.xlu0 %v1351_v25, %s1660_s24 }
  0x69   : > { %483 = vrot.lane.b32.xlu1 %v1860_v22, %s1656_s8  ;;  %467 = vrot.lane.b32.xlu0 %v1863_v23, %s1656_s8 }
  0x6d   : > { %545 = vrot.lane.b32.xlu1 %v1359_v24, %s1657_s17  ;;  %529 = vrot.lane.b32.xlu0 %v1351_v25, %s1657_s17 }
  0x71   : > { %735 = vrot.lane.b32.xlu1 %v1360_v28, %s1660_s24  ;;  %719 = vrot.lane.b32.xlu0 %v1352_v29, %s1660_s24 }
  0x75   : > { %797 = vrot.lane.b32.xlu1 %v1375_v33, %s1661_s26  ;;  %781 = vrot.lane.b32.xlu0 %v1367_v34, %s1661_s26 }
  0x79   : > { %357 = vrot.lane.b32.xlu1 %v1359_v24, %s1654_s6  ;;  %341 = vrot.lane.b32.xlu0 %v1351_v25, %s1654_s6  ;;  %v1378_v25 = vld [vmem:[%s1755_s5 + $0xb2] sm:$0xff] }
  0x7d   : > { %547 = vrot.lane.b32.xlu1 %v1360_v28, %s1657_s17  ;;  %531 = vrot.lane.b32.xlu0 %v1352_v29, %s1657_s17 }
  0x81   : > { %609 = vrot.lane.b32.xlu1 %v1375_v33, %s1658_s18  ;;  %593 = vrot.lane.b32.xlu0 %v1367_v34, %s1658_s18 }
  0x85   : > { %799 = vrot.lane.b32.xlu1 %v1376_v37, %s1661_s26  ;;  %783 = vrot.lane.b32.xlu0 %v1368_v38, %s1661_s26 }
  0x89   : > { %359 = vrot.lane.b32.xlu1 %v1360_v28, %s1654_s6  ;;  %343 = vrot.lane.b32.xlu0 %v1352_v29, %s1654_s6 }
  0x8d   : > { %421 = vrot.lane.b32.xlu1 %v1375_v33, %s1655_s7  ;;  %405 = vrot.lane.b32.xlu0 %v1367_v34, %s1655_s7 }
  0x91   : > { %611 = vrot.lane.b32.xlu1 %v1376_v37, %s1658_s18  ;;  %595 = vrot.lane.b32.xlu0 %v1368_v38, %s1658_s18 }
  0x93   : > { %v1924_v41 = vpop.permute.xlu1 %335  ;;  %v1926_v42 = vpop.permute.xlu0 %333 }
  0x95   : > { %673 = vrot.lane.b32.xlu1 %v1919_v39, %s1659_s21  ;;  %657 = vrot.lane.b32.xlu0 %v1922_v40, %s1659_s21 }
  0x97   : > { %v1932_v43 = vpop.permute.xlu1 %351  ;;  %v1934_v44 = vpop.permute.xlu0 %349 }
  0x99   : > { %423 = vrot.lane.b32.xlu1 %v1376_v37, %s1655_s7  ;;  %407 = vrot.lane.b32.xlu0 %v1368_v38, %s1655_s7  ;;  %v179_v38 = vld [vmem:[%s1755_s5 + $0x60] sm:$0xff] }
  0x9b   : > { %v1938_v45 = vpop.permute.xlu1 %413  ;;  %v1940_v46 = vpop.permute.xlu0 %397 }
  0x9d   : > { %485 = vrot.lane.b32.xlu1 %v1919_v39, %s1656_s8  ;;  %469 = vrot.lane.b32.xlu0 %v1922_v40, %s1656_s8 }
  0x9f   : > { %v1952_v49 = vpop.permute.xlu1 %415  ;;  %v1954_v50 = vpop.permute.xlu0 %399 }
  0xa1   : > { %675 = vrot.lane.b32.xlu1 %v1947_v47, %s1659_s21  ;;  %659 = vrot.lane.b32.xlu0 %v1950_v48, %s1659_s21 }
  0xa3   : > { %v1962_v53 = vpop.permute.xlu1 %477  ;;  %v1964_v54 = vpop.permute.xlu0 %461 }
  0xa5   : > { %737 = vrot.lane.b32.xlu1 %v1361_v51, %s1660_s24  ;;  %721 = vrot.lane.b32.xlu0 %v1353_v52, %s1660_s24 }
  0xa7   : > { %v1968_v55 = vpop.permute.xlu1 %479  ;;  %v1970_v56 = vpop.permute.xlu0 %463 }
  0xa9   : > { %487 = vrot.lane.b32.xlu1 %v1947_v47, %s1656_s8  ;;  %471 = vrot.lane.b32.xlu0 %v1950_v48, %s1656_s8  ;;  %v1348_v47 = vld [vmem:[%s1755_s5 + $0xc8] sm:$0xff] }
  0xab   : > { %v1976_v57 = vpop.permute.xlu1 %541  ;;  %v1978_v58 = vpop.permute.xlu0 %525 }
  0xad   : > { %549 = vrot.lane.b32.xlu1 %v1361_v51, %s1657_s17  ;;  %533 = vrot.lane.b32.xlu0 %v1353_v52, %s1657_s17 }
  0xaf   : > { %v354_v61 = vpop.permute.xlu1 %353  ;;  %v338_v62 = vpop.permute.xlu0 %337 }
  0xb1   : > { %739 = vrot.lane.b32.xlu1 %v1362_v59, %s1660_s24  ;;  %723 = vrot.lane.b32.xlu0 %v1354_v60, %s1660_s24 }
  0xb3   : > { %v1988_v1 = vpop.permute.xlu1 %543  ;;  %v1990_v5 = vpop.permute.xlu0 %527 }
  0xb5   : > { %801 = vrot.lane.b32.xlu1 %v1377_v63, %s1661_s26  ;;  %785 = vrot.lane.b32.xlu0 %v1369_v0, %s1661_s26 }
  0xb7   : > { %v1994_v7 = vpop.permute.xlu1 %605  ;;  %v1996_v13 = vpop.permute.xlu0 %589 }
  0xb9   : > { %361 = vrot.lane.b32.xlu1 %v1361_v51, %s1654_s6  ;;  %345 = vrot.lane.b32.xlu0 %v1353_v52, %s1654_s6 }
  0xbb   : > { %v2000_v15 = vpop.permute.xlu1 %355  ;;  %v2002_v17 = vpop.permute.xlu0 %339 }
  0xbd   : > { %551 = vrot.lane.b32.xlu1 %v1362_v59, %s1657_s17  ;;  %535 = vrot.lane.b32.xlu0 %v1354_v60, %s1657_s17 }
  0xbf   : > { %v418_v19 = vpop.permute.xlu1 %417  ;;  %v402_v24 = vpop.permute.xlu0 %401 }
  0xc1   : > { %613 = vrot.lane.b32.xlu1 %v1377_v63, %s1658_s18  ;;  %597 = vrot.lane.b32.xlu0 %v1369_v0, %s1658_s18 }
  0xc3   : > { %v2010_v27 = vpop.permute.xlu1 %607  ;;  %v2012_v28 = vpop.permute.xlu0 %591 }
  0xc5   : > { %803 = vrot.lane.b32.xlu1 %v1378_v25, %s1661_s26  ;;  %787 = vrot.lane.b32.xlu0 %v1370_v26, %s1661_s26 }
  0xc7   : > { %v2016_v29 = vpop.permute.xlu1 %669  ;;  %v2018_v30 = vpop.permute.xlu0 %653 }
  0xc9   : > { %363 = vrot.lane.b32.xlu1 %v1362_v59, %s1654_s6  ;;  %347 = vrot.lane.b32.xlu0 %v1354_v60, %s1654_s6 }
  0xcb   : > { %v2022_v31 = vpop.permute.xlu1 %419  ;;  %v2024_v32 = vpop.permute.xlu0 %403 }
  0xcd   : > { %425 = vrot.lane.b32.xlu1 %v1377_v63, %s1655_s7  ;;  %409 = vrot.lane.b32.xlu0 %v1369_v0, %s1655_s7  ;;  %v840_v63 = vsel %vm829_vm1, %v1786_v8, %v354_v61  ;;  %v832_v0 = vsel %vm829_vm1, %v1789_v9, %v338_v62  ;;  %v180_v9 = vld [vmem:[%s1755_s5 + $0x68] sm:$0xff] }
  0xce   : > { %v849_v48 = vsel %vm846_vm2, %v832_v0, %v402_v24  ;;  %v838_v24 = vsel %vm829_vm1, %v179_v38, %v1934_v44 }
  0xcf   : > { %v482_v33 = vpop.permute.xlu1 %481  ;;  %v466_v34 = vpop.permute.xlu0 %465 }
  0xd0   : > { %v866_v61 = vsel %vm863_vm3, %v849_v48, %v466_v34  ;;  %v855_v48 = vsel %vm846_vm2, %v838_v24, %v1938_v45 }
  0xd1   : > { %615 = vrot.lane.b32.xlu1 %v1378_v25, %s1658_s18  ;;  %599 = vrot.lane.b32.xlu0 %v1370_v26, %s1658_s18 }
  0xd3   : > { %v2031_v36 = vpop.permute.xlu1 %671  ;;  %v2033_v37 = vpop.permute.xlu0 %655 }
  0xd5   : > { %677 = vrot.lane.b32.xlu1 %v1347_v35, %s1659_s21  ;;  %661 = vrot.lane.b32.xlu0 %v179_v38, %s1659_s21 }
  0xd7   : > { %v734_v51 = vpop.permute.xlu1 %733  ;;  %v718_v52 = vpop.permute.xlu0 %717 }
  0xd9   : > { %427 = vrot.lane.b32.xlu1 %v1378_v25, %s1655_s7  ;;  %411 = vrot.lane.b32.xlu0 %v1370_v26, %s1655_s7  ;;  %v171_v25 = vld [vmem:[%s1755_s5] sm:$0xff]  ;;  %v857_v26 = vsel %vm846_vm2, %v840_v63, %v418_v19 }
  0xda   : > { %v874_v40 = vsel %vm863_vm3, %v857_v26, %v482_v33  ;;  %v830_v19 = vsel %vm829_vm1, %v171_v25, %v1926_v42 }
  0xdb   : > { %v2040_v59 = vpop.permute.xlu1 %483  ;;  %v2042_v60 = vpop.permute.xlu0 %467 }
  0xdd   : > { %489 = vrot.lane.b32.xlu1 %v1347_v35, %s1656_s8  ;;  %473 = vrot.lane.b32.xlu0 %v179_v38, %s1656_s8 }
  0xdf   : > { %v546_v39 = vpop.permute.xlu1 %545  ;;  %v530_v18 = vpop.permute.xlu0 %529 }
  0xe0   : > { %v2058_v62 = vsel %vm880_vm4, %v874_v40, %v546_v39  ;;  %v2061_v35 = vsel %vm880_vm4, %v866_v61, %v530_v18  ;;  %v847_v39 = vsel %vm846_vm2, %v830_v19, %v1940_v46  ;;  %v1363_v40 = vld [vmem:[%s1755_s5 + $0xc1] sm:$0xff]  ;;  %v872_v18 = vsel %vm863_vm3, %v855_v48, %v1962_v53  ;;  %v1364_v61 = vld [vmem:[%s1755_s5 + $0xc9] sm:$0xff] }
  0xe1   : > { %679 = vrot.lane.b32.xlu1 %v1348_v47, %s1659_s21  ;;  %663 = vrot.lane.b32.xlu0 %v180_v9, %s1659_s21  ;;  %v864_v42 = vsel %vm863_vm3, %v847_v39, %v1964_v54  ;;  %v889_v34 = vsel %vm880_vm4, %v872_v18, %v1976_v57  ;;  %v1379_v48 = vld [vmem:[%s1755_s5 + $0xc2] sm:$0xff] }
  0xe2   : > { %v881_v45 = vsel %vm880_vm4, %v864_v42, %v1978_v58  ;;  %v906_v46 = vsel %vm897_vm5, %v889_v34, %v1994_v7 }
  0xe3   : > { %v736_v44 = vpop.permute.xlu1 %735  ;;  %v720_v33 = vpop.permute.xlu0 %719  ;;  %v898_v38 = vsel %vm897_vm5, %v881_v45, %v1996_v13  ;;  %v923_v53 = vsel %vm914_vm6, %v906_v46, %v2016_v29 }
  0xe4   : > { %v915_v54 = vsel %vm914_vm6, %v898_v38, %v2018_v30  ;;  %v940_v57 = vsel %vm931_vm7, %v923_v53, %v734_v51  ;;  %v841_v51 = vsel %vm829_vm1, %v1796_v10, %v2000_v15 }
  0xe5   : > { %741 = vrot.lane.b32.xlu1 %v1363_v40, %s1660_s24  ;;  %725 = vrot.lane.b32.xlu0 %v1765_v3, %s1660_s24  ;;  %v932_v58 = vsel %vm931_vm7, %v915_v54, %v718_v52  ;;  %v833_v52 = vsel %vm829_vm1, %v1799_v11, %v2002_v17  ;;  %v858_v25 = vsel %vm846_vm2, %v841_v51, %v2022_v31 }
  0xe6   : > { %v850_v26 = vsel %vm846_vm2, %v833_v52, %v2024_v32  ;;  %v875_v15 = vsel %vm863_vm3, %v858_v25, %v2040_v59  ;;  %v839_v32 = vsel %vm829_vm1, %v180_v9, %v1932_v43  ;;  %v1366_v52 = vld [vmem:[%s1755_s5 + $0xe1] sm:$0xff] }
  0xe7   : > { %v798_v7 = vpop.permute.xlu1 %797  ;;  %v782_v63 = vpop.permute.xlu0 %781  ;;  %v867_v11 = vsel %vm863_vm3, %v850_v26, %v2042_v60  ;;  %v856_v59 = vsel %vm846_vm2, %v839_v32, %v1952_v49 }
  0xe8   : > { %v949_v13 = vsel %vm948_vm8, %v932_v58, %v782_v63  ;;  %v957_v0 = vsel %vm948_vm8, %v940_v57, %v798_v7  ;;  %v873_v39 = vsel %vm863_vm3, %v856_v59, %v1968_v55  ;;  %v1350_v58 = vld [vmem:[%s1755_s5 + $0xe0] sm:$0xff] }
  0xe9   : > { %491 = vrot.lane.b32.xlu1 %v1348_v47, %s1656_s8  ;;  %475 = vrot.lane.b32.xlu0 %v180_v9, %s1656_s8  ;;  %v172_v47 = vld [vmem:[%s1755_s5 + $0x8] sm:$0xff]  ;;  %v890_v9 = vsel %vm880_vm4, %v873_v39, %v1988_v1 }
  0xea   : > { %1439 = vmatprep.mubr.msk.f32.mxu0 %vm970_vm9, %v949_v13  ;;  %1451 = vmatprep.mubr.msk.f32.mxu1 %vm970_vm9, %v957_v0  ;;  %v831_v31 = vsel %vm829_vm1, %v172_v47, %v1924_v41 }
  0xeb   : > { %v358_v29 = vpop.permute.xlu1 %357  ;;  %v342_v30 = vpop.permute.xlu0 %341  ;;  %v848_v60 = vsel %vm846_vm2, %v831_v31, %v1954_v50  ;;  %v907_v50 = vsel %vm897_vm5, %v890_v9, %v2010_v27  ;;  %v2429_v31 = vld [vmem:[#allocation5_spill] sm:$0xff] }
  0xec   : > { %v865_v41 = vsel %vm863_vm3, %v848_v60, %v1970_v56  ;;  %v924_v55 = vsel %vm914_vm6, %v907_v50, %v2031_v36  ;;  %v834_v45 = vsel %vm829_vm1, %v1846_v21, %v342_v30 }
  0xed   : > { %553 = vrot.lane.b32.xlu1 %v1363_v40, %s1657_s17  ;;  %537 = vrot.lane.b32.xlu0 %v1765_v3, %s1657_s17  ;;  %v882_v49 = vsel %vm880_vm4, %v865_v41, %v1990_v5  ;;  %v941_v1 = vsel %vm931_vm7, %v924_v55, %v736_v44  ;;  %v1380_v44 = vld [vmem:[%s1755_s5 + $0xca] sm:$0xff] }
  0xee   : > { %v899_v18 = vsel %vm897_vm5, %v882_v49, %v2012_v28 }
  0xef   : > { %v548_v17 = vpop.permute.xlu1 %547  ;;  %v532_v19 = vpop.permute.xlu0 %531  ;;  %v916_v56 = vsel %vm914_vm6, %v899_v18, %v2033_v37 }
  0xf0   : > { %v2121_v24 = vsel %vm880_vm4, %v875_v15, %v548_v17  ;;  %v2124_v3 = vsel %vm880_vm4, %v867_v11, %v532_v19  ;;  %v933_v5 = vsel %vm931_vm7, %v916_v56, %v720_v33  ;;  %v842_v33 = vsel %vm829_vm1, %v1843_v20, %v358_v29  ;;  %v1349_v20 = vld [vmem:[%s1755_s5 + $0xd8] sm:$0xff]  ;;  %v1382_v15 = vld [vmem:[%s1755_s5 + $0xe2] sm:$0xff] }
  0xf1   : > { %743 = vrot.lane.b32.xlu1 %v1364_v61, %s1660_s24  ;;  %727 = vrot.lane.b32.xlu0 %v1762_v2, %s1660_s24 }
  0xf3   : > { %v2142_v40 = vpop.permute.xlu1 %609  ;;  %v2144_v43 = vpop.permute.xlu0 %593 }
  0xf4   : > { %v908_v39 = vsel %vm897_vm5, %v2058_v62, %v2142_v40  ;;  %v900_v41 = vsel %vm897_vm5, %v2061_v35, %v2144_v43 }
  0xf5   : > { %805 = vrot.lane.b32.xlu1 %v1379_v48, %s1661_s26  ;;  %789 = vrot.lane.b32.xlu0 %v1772_v4, %s1661_s26 }
  0xf7   : > { %v800_v27 = vpop.permute.xlu1 %799  ;;  %v784_v42 = vpop.permute.xlu0 %783 }
  0xf8   : > { %v958_v28 = vsel %vm948_vm8, %v941_v1, %v800_v27  ;;  %v950_v34 = vsel %vm948_vm8, %v933_v5, %v784_v42 }
  0xf9   : > { %555 = vrot.lane.b32.xlu1 %v1364_v61, %s1657_s17  ;;  %539 = vrot.lane.b32.xlu0 %v1762_v2, %s1657_s17  ;;  %s1407_s17 = sshll.u32 %s1636_s12, 4 }
  0xfa   : > { %1440 = vmatmul.mubr.msk.f32.vlgmr.msra.gmra.mrb[0].mxu0 %vm970_vm9, %v950_v34  ;;  %1452 = vmatmul.mubr.msk.f32.vlgmr.msra.gmra.mrb[0].mxu1 %vm970_vm9, %v958_v28 }
  0xfb   : > { %v360_v36 = vpop.permute.xlu1 %359  ;;  %v344_v37 = vpop.permute.xlu0 %343 }
  0xfc   : > { %v843_v7 = vsel %vm829_vm1, %v1860_v22, %v360_v36  ;;  %v835_v63 = vsel %vm829_vm1, %v1863_v23, %v344_v37 }
  0xfd   : > { %617 = vrot.lane.b32.xlu1 %v1379_v48, %s1658_s18  ;;  %601 = vrot.lane.b32.xlu0 %v1772_v4, %s1658_s18 }
  0xff   : > { %v422_v2 = vpop.permute.xlu1 %421  ;;  %v406_v46 = vpop.permute.xlu0 %405 }
 0x100   : > { %v859_v38 = vsel %vm846_vm2, %v842_v33, %v422_v2  ;;  %v851_v53 = vsel %vm846_vm2, %v834_v45, %v406_v46 }
 0x101   : > { %807 = vrot.lane.b32.xlu1 %v1380_v44, %s1661_s26  ;;  %791 = vrot.lane.b32.xlu0 %v1779_v6, %s1661_s26 }
 0x103   : > { %v2183_v4 = vpop.permute.xlu1 %611  ;;  %v2185_v54 = vpop.permute.xlu0 %595 }
 0x104   : > { %v909_v36 = vsel %vm897_vm5, %v2121_v24, %v2183_v4  ;;  %v901_v37 = vsel %vm897_vm5, %v2124_v3, %v2185_v54  ;;  %v2430_v4 = vld [vmem:[#allocation6_spill] sm:$0xff] }
 0x105   : > { %619 = vrot.lane.b32.xlu1 %v1380_v44, %s1658_s18  ;;  %603 = vrot.lane.b32.xlu0 %v1779_v6, %s1658_s18  ;;  %s1403_s18 = sshll.u32 %s1640_s13, 5 }
 0x107   : > { %v674_v21 = vpop.permute.xlu1 %673  ;;  %v658_v57 = vpop.permute.xlu0 %657 }
 0x108   : > { %v925_v9 = vsel %vm914_vm6, %v908_v39, %v674_v21  ;;  %v917_v49 = vsel %vm914_vm6, %v900_v41, %v658_v57  ;;  %v2431_v21 = vld [vmem:[#allocation7_spill] sm:$0xff] }
 0x109   : > { %681 = vrot.lane.b32.xlu1 %v1349_v20, %s1659_s21  ;;  %665 = vrot.lane.b32.xlu0 %v1786_v8, %s1659_s21  ;;  %v1365_v8 = vld [vmem:[%s1755_s5 + $0xd9] sm:$0xff] }
 0x10b   : > { %v424_v13 = vpop.permute.xlu1 %423  ;;  %v408_v0 = vpop.permute.xlu0 %407 }
 0x10c   : > { %v860_v6 = vsel %vm846_vm2, %v843_v7, %v424_v13  ;;  %v852_v29 = vsel %vm846_vm2, %v835_v63, %v408_v0 }
 0x10d   : > { %683 = vrot.lane.b32.xlu1 %v1350_v58, %s1659_s21  ;;  %667 = vrot.lane.b32.xlu0 %v1796_v10, %s1659_s21  ;;  %v1381_v10 = vld [vmem:[%s1755_s5 + $0xda] sm:$0xff]  ;;  %s158_s5 = sand.u32 1, %s1628_s10   ;;  %s1198_s21 = sadd.s32 %s1407_s17, %s1403_s18 }
 0x10e   : > { %s1284_s6 = sshll.u32 %s158_s5, 7  ;;  %s2361_s12 = scalar_lea.sflag [#allocation3], %s158_s5 }
 0x10f   : > { %v486_v30 = vpop.permute.xlu1 %485  ;;  %v470_v51 = vpop.permute.xlu0 %469  ;;  %s2331_s8 = scalar_lea.vmem [#allocation2], %s1284_s6 }
 0x110   : > { %v876_v22 = vsel %vm863_vm3, %v859_v38, %v486_v30  ;;  %v868_v23 = vsel %vm863_vm3, %v851_v53, %v470_v51  ;;  %s1201_s30 = sshll.u32 %s2331_s8, 4  ;;  %s2353_s30 = int_to_ptr.vmem [resolvable:$true] %s1201_s30 }
 0x111   : > { %745 = vrot.lane.b32.xlu1 %v1365_v8, %s1660_s24  ;;  %729 = vrot.lane.b32.xlu0 %v1806_v12, %s1660_s24  ;;  %s1558_s13 = scalar_lea.vmem %s2353_s30, 2048 }
 0x112   : > { %p1559_p13 = scmp.ne.s32.totalorder %s2353_s30, %s1558_s13 }
 0x113   : > { %v676_v47 = vpop.permute.xlu1 %675  ;;  %v660_v25 = vpop.permute.xlu0 %659 }
 0x114   : > { %v926_v44 = vsel %vm914_vm6, %v909_v36, %v676_v47  ;;  %v918_v33 = vsel %vm914_vm6, %v901_v37, %v660_v25  ;;  %p1560_p0 = pnand %p1559_p13, %p1730_p3 }
 0x115   : > { %747 = vrot.lane.b32.xlu1 %v1366_v52, %s1660_s24  ;;  %731 = vrot.lane.b32.xlu0 %v1816_v14, %s1660_s24  ;;  %s1404_s24 = sshll.u32 %s1198_s21, 7 }
 0x116   : > { %s2351_s25 = scalar_lea.hbm %s2416_s2, %s1404_s24  ;;  %p1561_p1 = pneg %p1560_p0 }
 0x117   : > { %v738_v26 = vpop.permute.xlu1 %737  ;;  %v722_v61 = vpop.permute.xlu0 %721 }
 0x118   : > { %v942_v50 = vsel %vm931_vm7, %v925_v9, %v738_v26  ;;  %v934_v18 = vsel %vm931_vm7, %v917_v49, %v722_v61 }
 0x119   : > { %809 = vrot.lane.b32.xlu1 %v1381_v10, %s1661_s26  ;;  %793 = vrot.lane.b32.xlu0 %v1823_v16, %s1661_s26 }
 0x11b   : > { %v488_v11 = vpop.permute.xlu1 %487  ;;  %v472_v17 = vpop.permute.xlu0 %471 }
 0x11c   : > { %v877_v12 = vsel %vm863_vm3, %v860_v6, %v488_v11  ;;  %v869_v19 = vsel %vm863_vm3, %v852_v29, %v472_v17 }
 0x11d   : > { %811 = vrot.lane.b32.xlu1 %v1382_v15, %s1661_s26  ;;  %795 = vrot.lane.b32.xlu0 %v2429_v31, %s1661_s26  ;;  %s1662_s26 = smov [#allocation2]  }
 0x11e   : > { %s1562_s28 = sshll.u32 %s1662_s26, 4  ;;  %s1563_s28 = int_to_ptr.vmem [resolvable:$false] %s1562_s28 }
 0x11f   : > { %v550_v14 = vpop.permute.xlu1 %549  ;;  %v534_v32 = vpop.permute.xlu0 %533  ;;  %s1564_s29 = scalar_lea.vmem %s1563_s28, 4096  ;;  %p1565_p2 = scmp.lt.s32.totalorder %s2353_s30, %s1563_s28 }
 0x120   : > { %v2225_v59 = vsel %vm880_vm4, %v876_v22, %v550_v14  ;;  %v2228_v60 = vsel %vm880_vm4, %v868_v23, %v534_v32  ;;  %p1566_p4 = scmp.lt.s32.totalorder %s1564_s29, %s1558_s13 }
 0x122   : > { %p1567_p5 = por %p1566_p4, %p1565_p2 }
 0x123   : > { %v740_v16 = vpop.permute.xlu1 %739  ;;  %v724_v48 = vpop.permute.xlu0 %723 }
 0x124   : > { %v943_v45 = vsel %vm931_vm7, %v926_v44, %v740_v16  ;;  %v935_v2 = vsel %vm931_vm7, %v918_v33, %v724_v48  ;;  %p1568_p6 = pnand %p1567_p5, %p1561_p1 }
 0x127   : > { %v802_v55 = vpop.permute.xlu1 %801  ;;  %v786_v56 = vpop.permute.xlu0 %785 }
 0x128   : > { %v959_v1 = vsel %vm948_vm8, %v942_v50, %v802_v55  ;;  %v951_v5 = vsel %vm948_vm8, %v934_v18, %v786_v56 }
 0x129   : > { %1442 = vmatprep.mubr.msk.f32.mxu0 %vm970_vm9, %v951_v5  ;;  %1454 = vmatprep.mubr.msk.f32.mxu1 %vm970_vm9, %v959_v1 }
 0x12b   : > { %v362_v62 = vpop.permute.xlu1 %361  ;;  %v346_v35 = vpop.permute.xlu0 %345 }
 0x12c   : > { %v844_v54 = vsel %vm829_vm1, %v2430_v4, %v362_v62  ;;  %v836_v57 = vsel %vm829_vm1, %v2431_v21, %v346_v35  ;;  %v2432_v21 = vld [vmem:[#allocation8_spill] sm:$0xff] }
 0x12f   : > { %v552_v40 = vpop.permute.xlu1 %551  ;;  %v536_v43 = vpop.permute.xlu0 %535 }
 0x130   : > { %v894_v27 = vsel %vm880_vm4, %v877_v12, %v552_v40  ;;  %v886_v42 = vsel %vm880_vm4, %v869_v19, %v536_v43 }
 0x133   : > { %v614_v28 = vpop.permute.xlu1 %613  ;;  %v598_v34 = vpop.permute.xlu0 %597 }
 0x134   : > { %v910_v19 = vsel %vm897_vm5, %v2225_v59, %v614_v28  ;;  %v902_v31 = vsel %vm897_vm5, %v2228_v60, %v598_v34 }
 0x137   : > { %v804_v46 = vpop.permute.xlu1 %803  ;;  %v788_v38 = vpop.permute.xlu0 %787 }
 0x138   : > { %v960_v53 = vsel %vm948_vm8, %v943_v45, %v804_v46  ;;  %v952_v20 = vsel %vm948_vm8, %v935_v2, %v788_v38 }
 0x139   : > { %1443 = vmatmul.mubr.msk.f32.gmra.mrb[2].mxu0 %vm970_vm9, %v952_v20  ;;  %1455 = vmatmul.mubr.msk.f32.gmra.mrb[2].mxu1 %vm970_vm9, %v960_v53 }
 0x13b   : > { %v2260_v24 = vpop.permute.xlu1 %363  ;;  %v2262_v3 = vpop.permute.xlu0 %347 }
 0x13f   : > { %v426_v58 = vpop.permute.xlu1 %425  ;;  %v410_v7 = vpop.permute.xlu0 %409 }
 0x140   : > { %v861_v63 = vsel %vm846_vm2, %v844_v54, %v426_v58  ;;  %v853_v13 = vsel %vm846_vm2, %v836_v57, %v410_v7  ;;  %v845_v57 = vsel %vm829_vm1, %v2432_v21, %v2260_v24  ;;  %v2433_v58 = vld [vmem:[#allocation9_spill] sm:$0xff] }
 0x141   : > { %v837_v7 = vsel %vm829_vm1, %v2433_v58, %v2262_v3 }
 0x143   : > { %v616_v0 = vpop.permute.xlu1 %615  ;;  %v600_v6 = vpop.permute.xlu0 %599 }
 0x144   : > { %v911_v55 = vsel %vm897_vm5, %v894_v27, %v616_v0  ;;  %v903_v56 = vsel %vm897_vm5, %v886_v42, %v600_v6 }
 0x147   : > { %v678_v29 = vpop.permute.xlu1 %677  ;;  %v662_v8 = vpop.permute.xlu0 %661 }
 0x148   : > { %v927_v14 = vsel %vm914_vm6, %v910_v19, %v678_v29  ;;  %v919_v32 = vsel %vm914_vm6, %v902_v31, %v662_v8 }
 0x14b   : > { %v428_v30 = vpop.permute.xlu1 %427  ;;  %v412_v51 = vpop.permute.xlu0 %411 }
 0x14c   : > { %v854_v6 = vsel %vm846_vm2, %v837_v7, %v412_v51 }
 0x14f   : > { %v490_v22 = vpop.permute.xlu1 %489  ;;  %v474_v23 = vpop.permute.xlu0 %473 }
 0x150   : > { %v878_v46 = vsel %vm863_vm3, %v861_v63, %v490_v22  ;;  %v870_v38 = vsel %vm863_vm3, %v853_v13, %v474_v23  ;;  %v862_v13 = vsel %vm846_vm2, %v845_v57, %v428_v30 }
 0x153   : > { %v680_v52 = vpop.permute.xlu1 %679  ;;  %v664_v47 = vpop.permute.xlu0 %663 }
 0x154   : > { %v928_v1 = vsel %vm914_vm6, %v911_v55, %v680_v52  ;;  %v920_v5 = vsel %vm914_vm6, %v903_v56, %v664_v47 }
 0x157   : > { %v742_v25 = vpop.permute.xlu1 %741  ;;  %v726_v10 = vpop.permute.xlu0 %725 }
 0x158   : > { %v944_v16 = vsel %vm931_vm7, %v927_v14, %v742_v25  ;;  %v936_v48 = vsel %vm931_vm7, %v919_v32, %v726_v10 }
 0x15b   : > { %v492_v26 = vpop.permute.xlu1 %491  ;;  %v476_v61 = vpop.permute.xlu0 %475 }
 0x15c   : > { %v879_v22 = vsel %vm863_vm3, %v862_v13, %v492_v26  ;;  %v871_v24 = vsel %vm863_vm3, %v854_v6, %v476_v61 }
 0x15f   : > { %v554_v15 = vpop.permute.xlu1 %553  ;;  %v538_v11 = vpop.permute.xlu0 %537 }
 0x160   : > { %v895_v4 = vsel %vm880_vm4, %v878_v46, %v554_v15  ;;  %v887_v54 = vsel %vm880_vm4, %v870_v38, %v538_v11 }
 0x163   : > { %v744_v17 = vpop.permute.xlu1 %743  ;;  %v728_v12 = vpop.permute.xlu0 %727 }
 0x164   : > { %v945_v62 = vsel %vm931_vm7, %v928_v1, %v744_v17  ;;  %v937_v35 = vsel %vm931_vm7, %v920_v5, %v728_v12 }
 0x167   : > { %v806_v39 = vpop.permute.xlu1 %805  ;;  %v790_v41 = vpop.permute.xlu0 %789 }
 0x168   : > { %v961_v9 = vsel %vm948_vm8, %v944_v16, %v806_v39  ;;  %v953_v49 = vsel %vm948_vm8, %v936_v48, %v790_v41 }
 0x169   : > { %1445 = vmatprep.mubr.msk.f32.mxu0 %vm970_vm9, %v953_v49  ;;  %1457 = vmatprep.mubr.msk.f32.mxu1 %vm970_vm9, %v961_v9 }
 0x16b   : > { %v556_v59 = vpop.permute.xlu1 %555  ;;  %v540_v60 = vpop.permute.xlu0 %539 }
 0x16c   : > { %v896_v25 = vsel %vm880_vm4, %v879_v22, %v556_v59  ;;  %v888_v30 = vsel %vm880_vm4, %v871_v24, %v540_v60 }
 0x16f   : > { %v618_v50 = vpop.permute.xlu1 %617  ;;  %v602_v18 = vpop.permute.xlu0 %601 }
 0x170   : > { %v912_v0 = vsel %vm897_vm5, %v895_v4, %v618_v50  ;;  %v904_v63 = vsel %vm897_vm5, %v887_v54, %v602_v18 }
 0x173   : > { %v808_v40 = vpop.permute.xlu1 %807  ;;  %v792_v43 = vpop.permute.xlu0 %791 }
 0x174   : > { %v962_v28 = vsel %vm948_vm8, %v945_v62, %v808_v40  ;;  %v954_v34 = vsel %vm948_vm8, %v937_v35, %v792_v43 }
 0x175   : > { %1446 = vmatmul.mubr.msk.f32.gmra.mrb[4].mxu0 %vm970_vm9, %v954_v34  ;;  %1458 = vmatmul.mubr.msk.f32.gmra.mrb[4].mxu1 %vm970_vm9, %v962_v28 }
 0x177   : > { %v620_v27 = vpop.permute.xlu1 %619  ;;  %v604_v42 = vpop.permute.xlu0 %603 }
 0x178   : > { %v913_v26 = vsel %vm897_vm5, %v896_v25, %v620_v27  ;;  %v905_v61 = vsel %vm897_vm5, %v888_v30, %v604_v42 }
 0x17b   : > { %v682_v36 = vpop.permute.xlu1 %681  ;;  %v666_v37 = vpop.permute.xlu0 %665 }
 0x17c   : > { %v929_v29 = vsel %vm914_vm6, %v912_v0, %v682_v36  ;;  %v921_v8 = vsel %vm914_vm6, %v904_v63, %v666_v37 }
 0x17f   : > { %v684_v44 = vpop.permute.xlu1 %683  ;;  %v668_v33 = vpop.permute.xlu0 %667 }
 0x180   : > { %v930_v15 = vsel %vm914_vm6, %v913_v26, %v684_v44  ;;  %v922_v11 = vsel %vm914_vm6, %v905_v61, %v668_v33 }
 0x183   : > { %v746_v45 = vpop.permute.xlu1 %745  ;;  %v730_v2 = vpop.permute.xlu0 %729 }
 0x184   : > { %v946_v23 = vsel %vm931_vm7, %v929_v29, %v746_v45  ;;  %v938_v3 = vsel %vm931_vm7, %v921_v8, %v730_v2 }
 0x187   : > { %v748_v53 = vpop.permute.xlu1 %747  ;;  %v732_v20 = vpop.permute.xlu0 %731 }
 0x188   : > { %v947_v17 = vsel %vm931_vm7, %v930_v15, %v748_v53  ;;  %v939_v12 = vsel %vm931_vm7, %v922_v11, %v732_v20 }
 0x18b   : > { %v810_v52 = vpop.permute.xlu1 %809  ;;  %v794_v47 = vpop.permute.xlu0 %793 }
 0x18c   : > { %v963_v51 = vsel %vm948_vm8, %v946_v23, %v810_v52  ;;  %v955_v10 = vsel %vm948_vm8, %v938_v3, %v794_v47 }
 0x18d   : > { %1448 = vmatprep.mubr.msk.f32.mxu0 %vm970_vm9, %v955_v10  ;;  %1460 = vmatprep.mubr.msk.f32.mxu1 %vm970_vm9, %v963_v51 }
 0x18f   : > { %v812_v19 = vpop.permute.xlu1 %811  ;;  %v796_v31 = vpop.permute.xlu0 %795 }
 0x190   : > { %v964_v14 = vsel %vm948_vm8, %v947_v17, %v812_v19  ;;  %v956_v32 = vsel %vm948_vm8, %v939_v12, %v796_v31 }
 0x191   : > { %1449 = vmatmul.mubr.msk.f32.gmra.mrb[6].mxu0 %vm970_vm9, %v956_v32  ;;  %1461 = vmatmul.mubr.msk.f32.gmra.mrb[6].mxu1 %vm970_vm9, %v964_v14 }
 0x1cd   : > { %v1441_v16 = vpop.f32.mrb[0].mxu0  ;;  %v1453_v48 = vpop.f32.mrb[0].mxu1 }
 0x1ce   : > { %1169 = vst [vmem:[%s2331_s8 + $0x8] sm:$0xff] %v1441_v16  ;;  %1177 = vst [vmem:[%s2331_s8 + $0x48] sm:$0xff] %v1453_v48  ;;  %v1089_v39 = vpop.f32.mrb[1].mxu0  ;;  %v1129_v41 = vpop.f32.mrb[1].mxu1 }
 0x1cf   : > { %1168 = vst [vmem:[%s2331_s8] sm:$0xff] %v1089_v39  ;;  %1176 = vst [vmem:[%s2331_s8 + $0x40] sm:$0xff] %v1129_v41 }
 0x20c   : > { %v1444_v9 = vpop.f32.mrb[2].mxu0  ;;  %v1456_v49 = vpop.f32.mrb[2].mxu1 }
 0x20d   : > { %1171 = vst [vmem:[%s2331_s8 + $0x18] sm:$0xff] %v1444_v9  ;;  %1179 = vst [vmem:[%s2331_s8 + $0x58] sm:$0xff] %v1456_v49  ;;  %v1099_v59 = vpop.f32.mrb[3].mxu0  ;;  %v1139_v60 = vpop.f32.mrb[3].mxu1 }
 0x20e   : > { %1170 = vst [vmem:[%s2331_s8 + $0x10] sm:$0xff] %v1099_v59  ;;  %1178 = vst [vmem:[%s2331_s8 + $0x50] sm:$0xff] %v1139_v60 }
 0x248   : > { %v1447_v50 = vpop.f32.mrb[4].mxu0  ;;  %v1459_v18 = vpop.f32.mrb[4].mxu1 }
 0x249   : > { %1173 = vst [vmem:[%s2331_s8 + $0x28] sm:$0xff] %v1447_v50  ;;  %1181 = vst [vmem:[%s2331_s8 + $0x68] sm:$0xff] %v1459_v18  ;;  %v1109_v55 = vpop.f32.mrb[5].mxu0  ;;  %v1149_v56 = vpop.f32.mrb[5].mxu1 }
 0x24a   : > { %1172 = vst [vmem:[%s2331_s8 + $0x20] sm:$0xff] %v1109_v55  ;;  %1180 = vst [vmem:[%s2331_s8 + $0x60] sm:$0xff] %v1149_v56 }
 0x264   : > { %v1450_v1 = vpop.f32.mrb[6].mxu0  ;;  %v1462_v5 = vpop.f32.mrb[6].mxu1 }
 0x265   : > { %1175 = vst [vmem:[%s2331_s8 + $0x38] sm:$0xff] %v1450_v1  ;;  %1183 = vst [vmem:[%s2331_s8 + $0x78] sm:$0xff] %v1462_v5  ;;  %v1119_v62 = vpop.f32.mrb[7].mxu0  ;;  %v1159_v35 = vpop.f32.mrb[7].mxu1 }
 0x266   : > { %1174 = vst [vmem:[%s2331_s8 + $0x30] sm:$0xff] %v1119_v62  ;;  %1182 = vst [vmem:[%s2331_s8 + $0x70] sm:$0xff] %v1159_v35 }
 0x267   : > { %1571 = shalt.err (!%p1568_p6)
}
 0x268   : > { %s1572_s5 = scalar_lea.hbm %s2351_s25, 2048  ;;  %s1576_s17 = scalar_lea.hbm %s2416_s2, 8192 }
 0x269   : > { %p1573_p7 = scmp.ne.s32.totalorder %s2351_s25, %s1572_s5  ;;  %p1577_p11 = scmp.lt.u32.totalorder %s2351_s25, %s2416_s2 }
 0x26a   : > { %p1578_p12 = scmp.lt.u32.totalorder %s1576_s17, %s1572_s5  ;;  %p1580_p0 = scmp.lt.u32.totalorder %s1572_s5, %s2351_s25 }
 0x26b   : > { %p1574_p9 = pnand %p1573_p7, %p1730_p3 }
 0x26c   : > { %p1579_p13 = por %p1578_p12, %p1577_p11 }
 0x26d   : > { %p1575_p10 = pneg %p1574_p9 }
 0x26e   : > { %p1581_p1 = por %p1580_p0, %p1579_p13 }
 0x270   : > { %p1582_p2 = pnand %p1581_p1, %p1575_p10 }
 0x272   : > { %1585 = shalt.err (!%p1582_p2)
}
 0x273   : > { %s1663_s24 = smov 128  }
 0x274   : > { %1478 = dma.vmem_to_hbm [thread:$0]  (%p1730_p3), %s2353_s30, 2048, %s2351_s25, %s2361_s12, %s1663_s24, %s1663_s24, %s1655_s7  }
 0x275 PF: > { %p1484_p4 = scmp.ge.s32.totalorder %s1652_s16, 2  ;;  %s1216_s3 = sand.u32 1, %s1624_s9  }
 0x276   : > { %s1217_s4 = scalar_lea.sflag [#allocation3], %s1216_s3 }
 0x277   : > { %p1481_p5 = pnand %p1484_p4, %p1739_p8 }
 0x279   : > { %1619 = dma.done.wait (!%p1481_p5), %s1217_s4, 2048  }
 0x27a   : > { %1621 = vsyncadd (!%p1481_p5), %s1217_s4, 4294965248  ;;  %s15_s16 = sadd.s32 1, %s1652_s16   ;;  %s2434_s9 = smov %s1628_s10 }
 0x27b   : > { %p12_p6 = scmp.ge.s32.totalorder %s15_s16, 6   ;;  %s2435_s10 = smov %s1632_s11 }
 0x27c   : > { %s2436_s11 = smov %s1748_s27  ;;  %s2437_s12 = smov %s1644_s14 }
 0x27d   : > { %s2438_s13 = smov %s1648_s15  ;;  %s2439_s14 = smov %s2442_s19 }
 0x27e   : > { %s2440_s15 = smov %s2446_s20  ;;  %14 = sbr.rel (!%p12_p6) target bundleno = 5 (0x5), region = 65 }
 0x285   :  { %1222 = vsyncpa [#allocation3], 1 }
 0x286   :  { %1224 = vsyncpa [#allocation3 + $0x1], 1 }

</bundles_post_ra>
